<compile_context>
chip_gen: v6e
topology: v6e:2x2x1
jax: 0.10.0
libtpu: 0.0.40
codegen_flags: <defaults>
</compile_context>

<pallas_src>
import functools
import math

import jax
import jax.numpy as jnp
from jax.experimental import pallas as pl
from jax.experimental.pallas import tpu as pltpu


def _cdiv(a, b):
    return -(-a // b)


def _round_up(a, m):
    return ((a + m - 1) // m) * m


def _label_smoothing_kernel(x_ref, tgt_ref, out_ref, *,
                            block_n, block_v, chunk_w, grid_v,
                            smooth_val, beta, specials):
    """Accumulate per-row  sum_j c_j * x[row, j]  into the lane-dense output block.

    c_j = beta (= conf/sv) at the target column, 0 at the padding column and in
    the vocab-padding tail, 1 elsewhere (when smooth_val == 0: 1 at target, 0 else).
    The wrapper multiplies the row-sum of the output by sv (or conf) afterwards.
    """
    j = pl.program_id(1)

    @pl.when(j == 0)
    def _init():
        out_ref[...] = jnp.zeros_like(out_ref)

    # Loop-invariant local lane index (one iota per grid step, hoisted out of the
    # chunk loop); the per-tile offset is applied to the (block_n, 1) target vector.
    lane = jax.lax.broadcasted_iota(jnp.int32, (block_n, chunk_w), 1)
    tgt_local = tgt_ref[...] - j * block_v                      # (block_n, 1)

    n_chunks = block_v // chunk_w

    def accumulate(pad_local, tail):
        acc = out_ref[...]                                      # (block_n, chunk_w) f32
        for c in range(n_chunks):
            lo = c * chunk_w
            if tail is not None and lo >= tail:
                continue                                        # chunk is pure vocab padding
            xs = x_ref[:, lo:lo + chunk_w].astype(jnp.float32)  # single f32 upcast, in-kernel
            hit = lane == (tgt_local - lo)                      # (block_n, chunk_w)
            if smooth_val > 0.0:
                contrib = jnp.where(hit, beta * xs, xs)
            else:
                # smoothing == 0: only the target column carries weight.
                contrib = jnp.where(hit, xs, 0.0)
            if pad_local is not None and lo <= pad_local < lo + chunk_w:
                # Padding column: select (not multiply) so x == -inf cannot give NaN.
                contrib = jnp.where(lane == (pad_local - lo), 0.0, contrib)
            if tail is not None and tail < lo + chunk_w:
                # Partial last vocab tile: zero the garbage lanes.
                contrib = jnp.where(lane < (tail - lo), contrib, 0.0)
            acc = acc + contrib
        out_ref[...] = acc

    if not specials:
        # No padding-column / tail handling needed (e.g. smoothing == 0).
        accumulate(None, None)
    elif grid_v == 1:
        sj, pad_local, tail = specials[0]
        accumulate(pad_local, tail)
    else:
        if len(specials) < grid_v:
            pred = None
            for (sj, _, _) in specials:
                p = j != sj
                pred = p if pred is None else (pred & p)

            @pl.when(pred)
            def _normal():
                accumulate(None, None)          # full tiles: zero masking cost

        for (sj, pad_local, tail) in specials:
            @pl.when(j == sj)
            def _special(pad_local=pad_local, tail=tail):
                accumulate(pad_local, tail)


def label_smoothing_loss(x, target, *, size, padding_idx, smoothing,
                         block_n=256, block_v=4096):
    """x: (N, size) log-probs (bf16/f32); target: (N,) int labels. Scalar f32 loss."""
    n, v = x.shape
    assert v == size
    if smoothing > 0.0:
        assert size > 2, "smoothing > 0 requires size > 2 (smooth_val = smoothing/(size-2))"

    confidence = float(1.0 - smoothing)
    smooth_val = float(smoothing / (size - 2)) if smoothing > 0.0 else 0.0

    # ---- tile sizes ------------------------------------------------------
    bn = _round_up(min(block_n, n), 8)
    if _cdiv(n, bn) < 2 and n > 8:
        # Keep >= 2 row tiles so both v7x TensorCores get work on the parallel axis.
        bn = _round_up(_cdiv(n, 2), 8)
    if v < 128:
        bv = v
    else:
        bv = max(128, (min(block_v, v) // 128) * 128)
    chunk_w = 128 if bv >= 128 else bv
    grid_n = _cdiv(n, bn)
    grid_v = _cdiv(v, bv)
    padded_n = grid_n * bn
    tail = v - (grid_v - 1) * bv                 # valid columns in the last vocab tile
    has_tail = (tail != bv)

    # ---- compile-time constants of the smoothed distribution -------------
    const_row = 0.0
    if confidence > 0.0:
        const_row += confidence * math.log(confidence)
    if smooth_val > 0.0:
        const_row += (size - 2) * smooth_val * math.log(smooth_val)
    beta = (confidence / smooth_val) if smooth_val > 0.0 else 0.0
    scale_out = smooth_val if smooth_val > 0.0 else confidence

    # ---- which vocab tiles need extra masking (trace-time only) ----------
    specials = {}
    if smooth_val > 0.0:
        if has_tail:
            specials[grid_v - 1] = [None, tail]
        jp = int(padding_idx) // bv
        specials.setdefault(jp, [None, None])[0] = int(padding_idx) % bv
    specials = tuple((sj, e[0], e[1]) for sj, e in sorted(specials.items()))

    kernel = functools.partial(
        _label_smoothing_kernel,
        block_n=bn, block_v=bv, chunk_w=chunk_w, grid_v=grid_v,
        smooth_val=smooth_val, beta=beta, specials=specials)

    # Size VMEM from the actual dtype; leave headroom for Mosaic scratch.
    vmem_need = (2 * bn * bv * x.dtype.itemsize    # double-buffered x tiles
                 + 2 * bn * 4                      # target column
                 + 2 * bn * chunk_w * 4            # resident output/accumulator block
                 + (2 << 20))
    vmem_limit = int(min(64 * 1024 * 1024, max(vmem_need, 16 * 1024 * 1024)))

    tgt2d = target.reshape(n, 1).astype(jnp.int32)

    out = pl.pallas_call(
        kernel,
        out_shape=jax.ShapeDtypeStruct((padded_n, chunk_w), jnp.float32),
        grid_spec=pltpu.PrefetchScalarGridSpec(
            num_scalar_prefetch=0,
            grid=(grid_n, grid_v),
            in_specs=[
                pl.BlockSpec((bn, bv), lambda i, j: (i, j)),
                pl.BlockSpec((bn, 1), lambda i, j: (i, 0)),
            ],
            out_specs=pl.BlockSpec((bn, chunk_w), lambda i, j: (i, 0)),
        ),
        compiler_params=pltpu.CompilerParams(
            dimension_semantics=("parallel", "arbitrary"),
            vmem_limit_bytes=vmem_limit),
    )(x, tgt2d)                                   # native dtype in; no wrapper-side copy of x

    # Tiny epilogue: 128-lane reduce, scale, per-row constant, padding-row mask.
    per_row = jnp.sum(out[:n], axis=-1) * scale_out          # = sum_j w_j x_j per row
    keep = target != padding_idx
    return jnp.sum(jnp.where(keep, const_row - per_row, 0.0))


if __name__ == "__main__":
    key = jax.random.PRNGKey(0)
    N, V = 18, 520               # deliberately not multiples of 8 / 128 to exercise masking
    padding_idx = 0
    smoothing = 0.1

    k1, k2 = jax.random.split(key)
    logits = jax.random.normal(k1, (N, V), dtype=jnp.float32)
    x = jax.nn.log_softmax(logits, axis=-1).astype(jnp.bfloat16)   # model-native bf16 log-probs
    target = jax.random.randint(k2, (N,), 0, V, dtype=jnp.int32)
    target = target.at[3].set(padding_idx)                         # include padded positions
    target = target.at[11].set(padding_idx)

    # Small block sizes so the demo exercises the row x vocab grid, the padding-column
    # tile, a "normal" tile and the partial last vocab tile.
    loss = label_smoothing_loss(x, target, size=V, padding_idx=padding_idx,
                                smoothing=smoothing, block_n=8, block_v=256)
    jax.block_until_ready(loss)

    # Pure-JAX reference of the same semantics (KLDivLoss(sum) vs smoothed dist).
    x32 = x.astype(jnp.float32)
    cols = jnp.arange(V)[None, :]
    td = jnp.where(cols == target[:, None], 1.0 - smoothing, smoothing / (V - 2))
    td = jnp.where(cols == padding_idx, 0.0, td)
    td = jnp.where(target[:, None] == padding_idx, 0.0, td)
    ref = jnp.sum(jnp.where(td > 0, td * (jnp.log(jnp.where(td > 0, td, 1.0)) - x32), 0.0))
    assert jnp.allclose(loss, ref, rtol=1e-3, atol=1e-3), (loss, ref)

    print("KERNEL_OK")
</pallas_src>

<mosaic_0001>
module attributes {stable_mosaic.version = 11 : i64} {
  func.func @_label_smoothing_kernel(%arg0: i32, %arg1: i32, %arg2: memref<8x256xbf16, #tpu.memory_space<vmem>>, %arg3: memref<8x1xi32, #tpu.memory_space<vmem>>, %arg4: memref<8x128xf32, #tpu.memory_space<vmem>>) attributes {dimension_semantics = [#tpu.dimension_semantics<parallel>, #tpu.dimension_semantics<arbitrary>], iteration_bounds = array<i64: 3, 3>, scalar_prefetch = 0 : i64, scratch_operands = 0 : i64, tpu.core_type = #tpu.core_type<tc>, window_params = [{transform_indices = @transform_0, window_bounds = array<i64: 8, 256>}, {transform_indices = @transform_1, window_bounds = array<i64: 8, 1>}, {transform_indices = @transform_2, window_bounds = array<i64: 8, 128>}]} {
    %c0_i32 = arith.constant 0 : i32
    %0 = arith.cmpi eq, %arg1, %c0_i32 : i32
    %1 = arith.extui %0 : i1 to i32
    %c0_i32_0 = arith.constant 0 : i32
    %2 = arith.cmpi ne, %1, %c0_i32_0 : i32
    scf.if %2 {
      %cst = arith.constant 0.000000e+00 : f32
      %19 = vector.broadcast %cst : f32 to vector<8x128xf32>
      %c0_8 = arith.constant 0 : index
      %c0_9 = arith.constant 0 : index
      %20 = vector.load %arg4[%c0_8, %c0_9] : memref<8x128xf32, #tpu.memory_space<vmem>>, vector<8x128xf32>
      tpu.vector_store %arg4[%c0_8, %c0_9], %19 {strides = array<i32>} : memref<8x128xf32, #tpu.memory_space<vmem>>, vector<8x128xf32>,
    } else {
    }
    %3 = tpu.iota {dimensions = array<i32: 1>} : vector<8x128xi32>
    %c0 = arith.constant 0 : index
    %c0_1 = arith.constant 0 : index
    %4 = vector.load %arg3[%c0, %c0_1] : memref<8x1xi32, #tpu.memory_space<vmem>>, vector<8x1xi32>
    %c256_i32 = arith.constant 256 : i32
    %5 = arith.muli %arg1, %c256_i32 : i32
    %6 = vector.broadcast %5 : i32 to vector<8x1xi32>
    %7 = arith.subi %4, %6 : vector<8x1xi32>
    %c0_i32_2 = arith.constant 0 : i32
    %8 = arith.cmpi ne, %arg1, %c0_i32_2 : i32
    %c2_i32 = arith.constant 2 : i32
    %9 = arith.cmpi ne, %arg1, %c2_i32 : i32
    %10 = arith.andi %8, %9 : i1
    %11 = arith.extui %10 : i1 to i32
    %c0_i32_3 = arith.constant 0 : i32
    %12 = arith.cmpi ne, %11, %c0_i32_3 : i32
    scf.if %12 {
      %c0_8 = arith.constant 0 : index
      %c0_9 = arith.constant 0 : index
      %19 = vector.load %arg4[%c0_8, %c0_9] : memref<8x128xf32, #tpu.memory_space<vmem>>, vector<8x128xf32>
      %c0_10 = arith.constant 0 : index
      %c0_11 = arith.constant 0 : index
      %20 = vector.load %arg2[%c0_10, %c0_11] : memref<8x256xbf16, #tpu.memory_space<vmem>>, vector<8x128xbf16>
      %21 = arith.extf %20 : vector<8x128xbf16> to vector<8x128xf32>
      %c0_i32_12 = arith.constant 0 : i32
      %22 = vector.broadcast %c0_i32_12 : i32 to vector<8x1xi32>
      %23 = arith.subi %7, %22 : vector<8x1xi32>
      %24 = vector.broadcast %23 : vector<8x1xi32> to vector<8x128xi32>
      %25 = arith.cmpi eq, %3, %24 : vector<8x128xi32>
      %cst = arith.constant 4.662000e+03 : f32
      %26 = vector.broadcast %cst : f32 to vector<8x128xf32>
      %27 = arith.mulf %26, %21 : vector<8x128xf32>
      %28 = arith.select %25, %27, %21 : vector<8x128xi1>, vector<8x128xf32>
      %29 = arith.addf %19, %28 : vector<8x128xf32>
      %c0_13 = arith.constant 0 : index
      %c128 = arith.constant 128 : index
      %30 = vector.load %arg2[%c0_13, %c128] : memref<8x256xbf16, #tpu.memory_space<vmem>>, vector<8x128xbf16>
      %31 = arith.extf %30 : vector<8x128xbf16> to vector<8x128xf32>
      %c128_i32 = arith.constant 128 : i32
      %32 = vector.broadcast %c128_i32 : i32 to vector<8x1xi32>
      %33 = arith.subi %7, %32 : vector<8x1xi32>
      %34 = vector.broadcast %33 : vector<8x1xi32> to vector<8x128xi32>
      %35 = arith.cmpi eq, %3, %34 : vector<8x128xi32>
      %cst_14 = arith.constant 4.662000e+03 : f32
      %36 = vector.broadcast %cst_14 : f32 to vector<8x128xf32>
      %37 = arith.mulf %36, %31 : vector<8x128xf32>
      %38 = arith.select %35, %37, %31 : vector<8x128xi1>, vector<8x128xf32>
      %39 = arith.addf %29, %38 : vector<8x128xf32>
      %c0_15 = arith.constant 0 : index
      %c0_16 = arith.constant 0 : index
      %40 = vector.load %arg4[%c0_15, %c0_16] : memref<8x128xf32, #tpu.memory_space<vmem>>, vector<8x128xf32>
      tpu.vector_store %arg4[%c0_15, %c0_16], %39 {strides = array<i32>} : memref<8x128xf32, #tpu.memory_space<vmem>>, vector<8x128xf32>,
    } else {
    }
    %c0_i32_4 = arith.constant 0 : i32
    %13 = arith.cmpi eq, %arg1, %c0_i32_4 : i32
    %14 = arith.extui %13 : i1 to i32
    %c0_i32_5 = arith.constant 0 : i32
    %15 = arith.cmpi ne, %14, %c0_i32_5 : i32
    scf.if %15 {
      %c0_8 = arith.constant 0 : index
      %c0_9 = arith.constant 0 : index
      %19 = vector.load %arg4[%c0_8, %c0_9] : memref<8x128xf32, #tpu.memory_space<vmem>>, vector<8x128xf32>
      %c0_10 = arith.constant 0 : index
      %c0_11 = arith.constant 0 : index
      %20 = vector.load %arg2[%c0_10, %c0_11] : memref<8x256xbf16, #tpu.memory_space<vmem>>, vector<8x128xbf16>
      %21 = arith.extf %20 : vector<8x128xbf16> to vector<8x128xf32>
      %c0_i32_12 = arith.constant 0 : i32
      %22 = vector.broadcast %c0_i32_12 : i32 to vector<8x1xi32>
      %23 = arith.subi %7, %22 : vector<8x1xi32>
      %24 = vector.broadcast %23 : vector<8x1xi32> to vector<8x128xi32>
      %25 = arith.cmpi eq, %3, %24 : vector<8x128xi32>
      %cst = arith.constant 4.662000e+03 : f32
      %26 = vector.broadcast %cst : f32 to vector<8x128xf32>
      %27 = arith.mulf %26, %21 : vector<8x128xf32>
      %28 = arith.select %25, %27, %21 : vector<8x128xi1>, vector<8x128xf32>
      %c0_i32_13 = arith.constant 0 : i32
      %29 = vector.broadcast %c0_i32_13 : i32 to vector<8x128xi32>
      %30 = arith.cmpi eq, %3, %29 : vector<8x128xi32>
      %cst_14 = arith.constant 0.000000e+00 : f32
      %31 = vector.broadcast %cst_14 : f32 to vector<8x128xf32>
      %32 = arith.select %30, %31, %28 : vector<8x128xi1>, vector<8x128xf32>
      %33 = arith.addf %19, %32 : vector<8x128xf32>
      %c0_15 = arith.constant 0 : index
      %c128 = arith.constant 128 : index
      %34 = vector.load %arg2[%c0_15, %c128] : memref<8x256xbf16, #tpu.memory_space<vmem>>, vector<8x128xbf16>
      %35 = arith.extf %34 : vector<8x128xbf16> to vector<8x128xf32>
      %c128_i32 = arith.constant 128 : i32
      %36 = vector.broadcast %c128_i32 : i32 to vector<8x1xi32>
      %37 = arith.subi %7, %36 : vector<8x1xi32>
      %38 = vector.broadcast %37 : vector<8x1xi32> to vector<8x128xi32>
      %39 = arith.cmpi eq, %3, %38 : vector<8x128xi32>
      %cst_16 = arith.constant 4.662000e+03 : f32
      %40 = vector.broadcast %cst_16 : f32 to vector<8x128xf32>
      %41 = arith.mulf %40, %35 : vector<8x128xf32>
      %42 = arith.select %39, %41, %35 : vector<8x128xi1>, vector<8x128xf32>
      %43 = arith.addf %33, %42 : vector<8x128xf32>
      %c0_17 = arith.constant 0 : index
      %c0_18 = arith.constant 0 : index
      %44 = vector.load %arg4[%c0_17, %c0_18] : memref<8x128xf32, #tpu.memory_space<vmem>>, vector<8x128xf32>
      tpu.vector_store %arg4[%c0_17, %c0_18], %43 {strides = array<i32>} : memref<8x128xf32, #tpu.memory_space<vmem>>, vector<8x128xf32>,
    } else {
    }
    %c2_i32_6 = arith.constant 2 : i32
    %16 = arith.cmpi eq, %arg1, %c2_i32_6 : i32
    %17 = arith.extui %16 : i1 to i32
    %c0_i32_7 = arith.constant 0 : i32
    %18 = arith.cmpi ne, %17, %c0_i32_7 : i32
    scf.if %18 {
      %c0_8 = arith.constant 0 : index
      %c0_9 = arith.constant 0 : index
      %19 = vector.load %arg4[%c0_8, %c0_9] : memref<8x128xf32, #tpu.memory_space<vmem>>, vector<8x128xf32>
      %c0_10 = arith.constant 0 : index
      %c0_11 = arith.constant 0 : index
      %20 = vector.load %arg2[%c0_10, %c0_11] : memref<8x256xbf16, #tpu.memory_space<vmem>>, vector<8x128xbf16>
      %21 = arith.extf %20 : vector<8x128xbf16> to vector<8x128xf32>
      %c0_i32_12 = arith.constant 0 : i32
      %22 = vector.broadcast %c0_i32_12 : i32 to vector<8x1xi32>
      %23 = arith.subi %7, %22 : vector<8x1xi32>
      %24 = vector.broadcast %23 : vector<8x1xi32> to vector<8x128xi32>
      %25 = arith.cmpi eq, %3, %24 : vector<8x128xi32>
      %cst = arith.constant 4.662000e+03 : f32
      %26 = vector.broadcast %cst : f32 to vector<8x128xf32>
      %27 = arith.mulf %26, %21 : vector<8x128xf32>
      %28 = arith.select %25, %27, %21 : vector<8x128xi1>, vector<8x128xf32>
      %c8_i32 = arith.constant 8 : i32
      %29 = vector.broadcast %c8_i32 : i32 to vector<8x128xi32>
      %30 = arith.cmpi slt, %3, %29 : vector<8x128xi32>
      %cst_13 = arith.constant 0.000000e+00 : f32
      %31 = vector.broadcast %cst_13 : f32 to vector<8x128xf32>
      %32 = arith.select %30, %28, %31 : vector<8x128xi1>, vector<8x128xf32>
      %33 = arith.addf %19, %32 : vector<8x128xf32>
      %c0_14 = arith.constant 0 : index
      %c0_15 = arith.constant 0 : index
      %34 = vector.load %arg4[%c0_14, %c0_15] : memref<8x128xf32, #tpu.memory_space<vmem>>, vector<8x128xf32>
      tpu.vector_store %arg4[%c0_14, %c0_15], %33 {strides = array<i32>} : memref<8x128xf32, #tpu.memory_space<vmem>>, vector<8x128xf32>,
    } else {
    }
    return
  }
  func.func @transform_0(%arg0: i32, %arg1: i32) -> (i32, i32) {
    %c0_i32 = arith.constant 0 : i32
    return %arg0, %arg1 : i32, i32
  }
  func.func @transform_1(%arg0: i32, %arg1: i32) -> (i32, i32) {
    %c0_i32 = arith.constant 0 : i32
    %c0_i32_0 = arith.constant 0 : i32
    return %arg0, %c0_i32 : i32, i32
  }
  func.func @transform_2(%arg0: i32, %arg1: i32) -> (i32, i32) {
    %c0_i32 = arith.constant 0 : i32
    %c0_i32_0 = arith.constant 0 : i32
    return %arg0, %c0_i32 : i32, i32
  }
}

</mosaic_0001>

<bundles_post_ra>
// kernel: tpu_custom_call.1
= control target key start
LH: loop header
LB: loop body
LE: loop exit
PB: predicated region body
PF: predicated region fallthrough
CT: control target
= control target key end

     0   :  { %7 = vsyncpa [#allocation3], 0  ;;  %s918_s0 = inlined_call_operand.hbm [shape: bf16[18,520], index: 0, kind: input, shape index: {}]   ;;  %s919_s1 = inlined_call_operand.vmem [shape: s32[18,1], index: 1, kind: input, shape index: {}]   ;;  %s920_s2 = inlined_call_operand.hbm [shape: f32[24,128], index: 2, kind: output, shape index: {}]  }
   0x1   :  { %9 = vsyncpa [#allocation3 + $0x1], 0 }
   0x2   :  { %10 = vsyncpa [#allocation4], 0 }
   0x3   :  { %12 = vsyncpa [#allocation4 + $0x1], 0  ;;  %s693_s9 = smov 0   ;;  %s695_s10 = smov 0  }
   0x4   :  { %s697_s11 = smov 0   ;;  %s699_s12 = smov 0  }
   0x5   :  { %s701_s13 = smov 0   ;;  %s703_s14 = smov 0  }
   0x6   :  { %s705_s15 = smov 0   ;;  %s707_s16 = smov 0  }
   0x7   :  { %s709_s17 = smov 0   ;;  %s711_s18 = smov 0  }
   0x8   :  { %s713_s19 = smov 0  }
   0x9 LB: > { %924 = sst [smem:[#allocation8_spill]] %s662_s17  ;;  %s395_s20 = sadd.s32 4294967295, %s670_s19   ;;  %s670_s19 = sphi %s713_s19, %s18_s19   ;;  %s666_s18 = sphi %s711_s18, %s943_s18   ;;  %s662_s17 = sphi %s709_s17, %s934_s17   ;;  %s658_s16 = sphi %s707_s16, %s942_s16   ;;  %s654_s15 = sphi %s705_s15, %s933_s15   ;;  %s650_s14 = sphi %s703_s14, %s941_s14   ;;  %s646_s13 = sphi %s701_s13, %s940_s13   ;;  %s642_s12 = sphi %s699_s12, %s939_s12   ;;  %s638_s11 = sphi %s697_s11, %s938_s11   ;;  %s634_s10 = sphi %s695_s10, %s937_s10   ;;  %s630_s9 = sphi %s693_s9, %s936_s9  }
   0xa   : > { %s396_s21 = sadd.s32 4294967294, %s670_s19   ;;  %s27_s22 = sadd.s32 1, %s662_s17 }
   0xb   : > { %s30_s23 = sadd.s32 1, %s666_s18  ;;  %p28_p0 = scmp.ge.s32.totalorder %s27_s22, 3 }
   0xc   : > { %s39_s24 = sadd.s32 1, %s650_s14  ;;  %p46_p1 = scmp.ne.s32.totalorder %s650_s14, %s646_s13 }
   0xd   : > { %p47_p2 = scmp.eq.s32.totalorder %s670_s19, 0  ;;  %s945_s22 = smov (%p28_p0, %s27_s22), 0 }
   0xe   : > { %925 = sst [smem:[#allocation9_spill]] %s945_s22  ;;  %s947_s23 = smov (!%p28_p0, %s30_s23), %s666_s18 }
   0xf   : > { %s35_s25 = ssub.s32 %s662_s17, %s945_s22  ;;  %p759_p3 = por %p47_p2, %p46_p1 }
  0x10   : > { %p32_p4 = scmp.ge.s32.totalorder %s947_s23, 3  ;;  %p52_p5 = scmp.ne.s32.totalorder %s646_s13, %s642_s12 }
  0x11   : > { %p53_p6 = scmp.eq.s32.totalorder %s395_s20, 0  ;;  %s91_s27 = sadd.s32 1, %s638_s11 }
  0x12   : > { %s949_s23 = smov (%p32_p4, %s947_s23), 0  ;;  %p101_p8 = scmp.ne.s32.totalorder %s638_s11, %s634_s10 }
  0x13   : > { %927 = sst [smem:[#allocation10_spill]] %s949_s23  ;;  %p767_p7 = por %p53_p6, %p52_p5 }
  0x14   : > { %s34_s29 = ssub.s32 %s666_s18, %s949_s23  ;;  %p102_p9 = scmp.eq.s32.totalorder %s395_s20, 8 }
  0x15   : > { %s36_s30 = sor.u32 %s35_s25, %s34_s29  ;;  %p89_p10 = scmp.eq.s32.totalorder %s34_s29, 0 }
  0x16   : > { %p37_p11 = scmp.eq.s32.totalorder %s36_s30, 0  ;;  %p775_p12 = por %p102_p9, %p101_p8 }
  0x17   : > { %s780_s4 = scalar_select %p89_p10, %s638_s11, %s91_s27  }
  0x18   : > { %s783_s5 = scalar_select %p37_p11, %s650_s14, %s39_s24  }
  0x19   : > { %p107_p13 = scmp.ne.s32.totalorder %s634_s10, %s630_s9  ;;  %p108_p0 = scmp.eq.s32.totalorder %s396_s21, 8 }
  0x1a   : > { %930 = sst [smem:[#allocation11_spill]] %s783_s5  ;;  %p398_p2 = scmp.ge.s32.totalorder %s670_s19, 9 }
  0x1b   : > { %p787_p1 = por %p108_p0, %p107_p13 }
  0x1c   : > { %124 = sbr.rel (%p398_p2) target bundleno = 67 (0x43), region = 16 }
  0x21   : > { %127 = sbr.rel (!%p759_p3) target bundleno = 67 (0x43), region = 20  ;;  %s128_s7 = sand.u32 (%p759_p3), 1, %s650_s14  }
  0x22   : > { %s400_s8 = sshll.u32 (%p759_p3), %s662_s17, 1  ;;  %s399_s12 = sshll.u32 (%p759_p3), %s128_s7, 3 }
  0x23   : > { %s134_s20 = ssub.s32 (%p759_p3), 5, %s400_s8  ;;  %s799_s25 = scalar_lea.sflag (%p759_p3), [#allocation3], %s128_s7 }
  0x24   : > { %p135_p4 = scmp.lt.s32.totalorder (%p759_p3), %s134_s20, 2  ;;  %s132_s27 = scalar_lea.vmem (%p759_p3), [#allocation2], %s399_s12 }
  0x26   : > { %s951_s20 = smov (!%p135_p4, %s134_s20), 2 }
  0x27   : > { %s796_s24 = sshll.u32 %s951_s20, 6 }
  0x28   : > { %s139_s21 = ssub.s32 128, %s796_s24 }
  0x29   : > { %140 = vsyncadd %s799_s25, %s139_s21  ;;  %s420_s26 = smul.u32 5, %s666_s18  ;;  %p402_p3 = scmp.ne.s32.totalorder %s796_s24, 0 }
  0x2a   : > { %s148_s29 = sshll.u32 %s132_s27, 4  ;;  %s528_s21 = scalar_lea.hbm %s918_s0, 960  ;;  %s149_s29 = int_to_ptr.vmem [resolvable:$true] %s148_s29 }
  0x2b   : > { %s143_s30 = sadd.s32 %s420_s26, %s400_s8 }
  0x2c   : > { %s403_s23 = sshll.u32 %s143_s30, 6 }
  0x2d   : > { %s145_s17 = scalar_lea.hbm %s918_s0, %s403_s23 }
  0x2e   : > { %s524_s5 = scalar_lea.hbm %s145_s17, %s796_s24 }
  0x2f   : > { %p525_p5 = scmp.ne.s32.totalorder %s145_s17, %s524_s5  ;;  %p530_p9 = scmp.lt.s32.totalorder %s528_s21, %s524_s5 }
  0x31   : > { %p526_p6 = pnand %p525_p5, %p402_p3 }
  0x33   : > { %p527_p8 = pneg %p526_p6 }
  0x35   : > { %p532_p10 = pnand %p530_p9, %p527_p8 }
  0x37   : > { %535 = shalt.err (!%p532_p10)
}
  0x38   : > { %s536_s8 = scalar_lea.vmem %s149_s29, %s796_s24  ;;  %s672_s22 = smov [#allocation2]  }
  0x39   : > { %p537_p11 = scmp.ne.s32.totalorder %s149_s29, %s536_s8  ;;  %s540_s23 = sshll.u32 %s672_s22, 4  ;;  %s541_s23 = int_to_ptr.vmem [resolvable:$false] %s540_s23 }
  0x3a   : > { %s542_s27 = scalar_lea.vmem %s541_s23, 256  ;;  %p543_p2 = scmp.lt.s32.totalorder %s149_s29, %s541_s23 }
  0x3b   : > { %p538_p13 = pnand %p537_p11, %p402_p3  ;;  %p544_p4 = scmp.lt.s32.totalorder %s542_s27, %s536_s8 }
  0x3d   : > { %p539_p0 = pneg %p538_p13  ;;  %p545_p5 = por %p544_p4, %p543_p2 }
  0x3f   : > { %p546_p6 = pnand %p545_p5, %p539_p0 }
  0x41   : > { %549 = shalt.err (!%p546_p6)
}
  0x42   : > { %151 = dma.hbm_to_vmem [thread:$0]  (%p402_p3), %s145_s17, %s796_s24, %s149_s29, %s799_s25  }
  0x43 PF: > { %p406_p8 = scmp.ge.s32.totalorder %s670_s19, 1  ;;  %p160_p9 = scmp.lt.s32.totalorder %s670_s19, 10 }
  0x45   : > { %p161_p10 = pnand %p406_p8, %p160_p9 }
  0x46   : > { %s166_s5 = sand.u32 (!%p161_p10), 1, %s646_s13  }
  0x47   : > { %164 = sbr.rel (%p161_p10) target bundleno = 531 (0x213), region = 28  ;;  %s407_s26 = sshll.u32 (!%p161_p10), %s166_s5, 3 }
  0x48   : > { %s167_s30 = scalar_lea.sflag (!%p161_p10), [#allocation3], %s166_s5  ;;  %s823_s20 = scalar_lea.vmem (!%p161_p10), [#allocation2], %s407_s26 }
  0x4c   : > { %621 = dma.done.wait (%p767_p7), %s167_s30, 128  }
  0x4d   : > { %623 = vsyncadd (%p767_p7), %s167_s30, 4294967168  ;;  %s192_s17 = sand.u32 1, %s634_s10   ;;  %p200_p3 = scmp.lt.s32.totalorder %s658_s16, 2 }
  0x4e   : > { %s408_s24 = sshll.u32 %s192_s17, 3  ;;  %p410_p11 = scmp.ne.s32.totalorder %s654_s15, 0 }
  0x4f   : > { %s201_s25 = scalar_select %p200_p3, %s658_s16, 2 }
  0x50   : > { %s837_s8 = scalar_lea.vmem [#allocation5], %s408_s24  ;;  %207 = sbr.rel (%p410_p11) target bundleno = 87 (0x57), region = 36 }
  0x51   : > { %s409_s29 = sshll.u32 %s201_s25, 3 }
  0x52   : > { %s203_s21 = scalar_lea.vmem %s919_s1, %s409_s29 }
  0x55   : > { %v673_v0 = vmov 0.0  }
  0x56   : > { %208 = vst [vmem:[%s837_s8] sm:$0xff] %v673_v0 }
  0x57 PF: > { %v209_v1 = vlaneseq  ;;  %v211_v2 = vld [vmem:[%s203_s21] sm:$0xff]  ;;  %s411_s28 = sshll.u32 %s654_s15, 8  ;;  %p216_p7 = scmp.ne.s32.totalorder %s654_s15, 2 }
  0x58   : > { %v213_v3 = vstv %s411_s28 }
  0x59   : > { %v210_v4 = vand.u32 127, %v209_v1  ;;  %v214_v5 = vsub.s32 %v211_v2, %v213_v3  ;;  %p217_p13 = pnand %p410_p11, %p216_p7 }
  0x5b   : > { %220 = sbr.rel (%p217_p13) target bundleno = 231 (0xe7), region = 40 }
  0x60   : > { %v674_v6 = vmov 0   ;;  %v412_v7 = vadd.s32 4294967168, %v214_v5  ;;  %v222_v8 = vld [vmem:[%s823_s20] sm:$0xff]   ;;  %v221_v13 = vld [vmem:[%s837_s8] sm:$0xff] }
  0x61   : > { %521 = vset.pattern.permute.xlu0 %v674_v6  ;;  %v223_v9 = vunpack.c.l.bf16 %v222_v8  ;;  %v232_v11 = vunpack.c.h.bf16 %v222_v8 }
  0x62   : > { %225 = vperm.xlu0 %521, %v214_v5  }
  0x63   : > { %v228_v10 = vmul.f32 4662.0, %v223_v9  ;;  %v238_v15 = vmul.f32 4662.0, %v232_v11 }
  0x66   : > { %235 = vperm.xlu0 %521, %v412_v7  }
  0xdd   : > { %v226_v12 = vpop.permute.xlu0 %225 }
  0xde   : > { %vm227_vm0 = vcmp.eq.s32.totalorder %v210_v4, %v226_v12 }
  0xdf   : > { %v229_v14 = vsel %vm227_vm0, %v228_v10, %v223_v9 }
  0xe0   : > { %v230_v17 = vadd.f32 %v229_v14, %v221_v13 }
  0xe1   : > { %v236_v16 = vpop.permute.xlu0 %235 }
  0xe2   : > { %vm237_vm1 = vcmp.eq.s32.totalorder %v210_v4, %v236_v16 }
  0xe3   : > { %v239_v18 = vsel %vm237_vm1, %v238_v15, %v232_v11 }
  0xe4   : > { %v240_v19 = vadd.f32 %v239_v18, %v230_v17 }
  0xe6   : > { %241 = vst [vmem:[%s837_s8] sm:$0xff] %v240_v19 }
  0xe7 PF: > { %244 = sbr.rel (%p410_p11) target bundleno = 371 (0x173), region = 44 }
  0xec   : > { %v675_v20 = vmov 0   ;;  %v414_v21 = vadd.s32 4294967168, %v214_v5  ;;  %v246_v22 = vld [vmem:[%s823_s20] sm:$0xff]   ;;  %vm254_vm2 = vcmp.eq.s32.totalorder %v210_v4, 0 }
  0xed   : > { %522 = vset.pattern.permute.xlu0 %v675_v20  ;;  %v247_v23 = vunpack.c.l.bf16 %v246_v22  ;;  %v258_v25 = vunpack.c.h.bf16 %v246_v22  ;;  %v245_v27 = vld [vmem:[%s837_s8] sm:$0xff] }
  0xee   : > { %249 = vperm.xlu0 %522, %v214_v5  }
  0xef   : > { %v252_v24 = vmul.f32 4662.0, %v247_v23  ;;  %v264_v29 = vmul.f32 4662.0, %v258_v25 }
  0xf2   : > { %261 = vperm.xlu0 %522, %v414_v21  }
 0x169   : > { %v250_v26 = vpop.permute.xlu0 %249 }
 0x16a   : > { %vm251_vm3 = vcmp.eq.s32.totalorder %v210_v4, %v250_v26 }
 0x16b   : > { %v253_v28 = vsel %vm251_vm3, %v252_v24, %v247_v23 }
 0x16c   : > { %v255_v30 = vsel %vm254_vm2, 0.0, %v253_v28 }
 0x16d   : > { %v256_v31 = vadd.f32 %v255_v30, %v245_v27  ;;  %v262_v32 = vpop.permute.xlu0 %261 }
 0x16e   : > { %vm263_vm4 = vcmp.eq.s32.totalorder %v210_v4, %v262_v32 }
 0x16f   : > { %v265_v33 = vsel %vm263_vm4, %v264_v29, %v258_v25 }
 0x170   : > { %v266_v34 = vadd.f32 %v265_v33, %v256_v31 }
 0x172   : > { %267 = vst [vmem:[%s837_s8] sm:$0xff] %v266_v34 }
 0x173 PF: > { %271 = sbr.rel (%p216_p7) target bundleno = 508 (0x1fc), region = 48 }
 0x178   : > { %v676_v35 = vmov 0   ;;  %v273_v36 = vld [vmem:[%s823_s20] sm:$0xf]  ;;  %vm281_vm5 = vcmp.lt.s32.totalorder %v210_v4, 8 }
 0x179   : > { %523 = vset.pattern.permute.xlu0 %v676_v35  ;;  %v274_v37 = vunpack.c.l.bf16 %v273_v36  ;;  %v272_v40 = vld [vmem:[%s837_s8] sm:$0xff] }
 0x17a   : > { %276 = vperm.xlu0 %523, %v214_v5  }
 0x17b   : > { %v279_v38 = vmul.f32 4662.0, %v274_v37 }
 0x1f5   : > { %v277_v39 = vpop.permute.xlu0 %276 }
 0x1f6   : > { %vm278_vm6 = vcmp.eq.s32.totalorder %v210_v4, %v277_v39 }
 0x1f7   : > { %v280_v41 = vsel %vm278_vm6, %v279_v38, %v274_v37 }
 0x1f8   : > { %v282_v42 = vsel %vm281_vm5, %v280_v41, 0.0 }
 0x1f9   : > { %v283_v43 = vadd.f32 %v282_v42, %v272_v40 }
 0x1fb   : > { %284 = vst [vmem:[%s837_s8] sm:$0xff] %v283_v43 }
 0x1fc PF: > { %s417_s15 = sshll.u32 %s658_s16, 7  ;;  %s299_s5 = sshll.u32 %s837_s8, 4  ;;  %s300_s5 = int_to_ptr.vmem [resolvable:$true] %s299_s5 }
 0x1fd   : > { %s297_s27 = scalar_lea.hbm %s920_s2, %s417_s15  ;;  %s286_s26 = scalar_lea.sflag [#allocation4], %s192_s17 }
 0x1fe   : > { %s550_s30 = scalar_lea.vmem %s300_s5, 128  ;;  %s677_s20 = smov [#allocation5]  }
 0x1ff   : > { %p551_p0 = scmp.ne.s32.totalorder %s300_s5, %s550_s30  ;;  %s554_s24 = sshll.u32 %s677_s20, 4  ;;  %s555_s24 = int_to_ptr.vmem [resolvable:$false] %s554_s24 }
 0x200   : > { %s556_s25 = scalar_lea.vmem %s555_s24, 256  ;;  %p557_p5 = scmp.lt.s32.totalorder %s300_s5, %s555_s24 }
 0x201   : > { %p552_p2 = pnand %p551_p0, %p775_p12  ;;  %p558_p6 = scmp.lt.s32.totalorder %s556_s25, %s550_s30 }
 0x203   : > { %p553_p4 = pneg %p552_p2  ;;  %p559_p8 = por %p558_p6, %p557_p5 }
 0x205   : > { %p560_p9 = pnand %p559_p8, %p553_p4 }
 0x207   : > { %563 = shalt.err (!%p560_p9)
}
 0x208   : > { %s564_s16 = scalar_lea.hbm %s297_s27, 128  ;;  %s568_s7 = scalar_lea.hbm %s920_s2, 384 }
 0x209   : > { %p565_p10 = scmp.ne.s32.totalorder %s297_s27, %s564_s16  ;;  %p569_p7 = scmp.lt.s32.totalorder %s297_s27, %s920_s2 }
 0x20a   : > { %p570_p13 = scmp.lt.s32.totalorder %s568_s7, %s564_s16 }
 0x20b   : > { %p566_p3 = pnand %p565_p10, %p775_p12 }
 0x20c   : > { %p571_p0 = por %p570_p13, %p569_p7 }
 0x20d   : > { %p567_p11 = pneg %p566_p3 }
 0x20f   : > { %p572_p2 = pnand %p571_p0, %p567_p11 }
 0x211   : > { %575 = shalt.err (!%p572_p2)
}
 0x212   : > { %422 = dma.vmem_to_hbm [thread:$0]  (%p775_p12), %s300_s5, 128, %s297_s27, %s286_s26  }
 0x213 PF: > { %p428_p4 = scmp.ge.s32.totalorder %s670_s19, 2  ;;  %s311_s8 = sand.u32 1, %s630_s9  }
 0x214   : > { %s312_s28 = scalar_lea.sflag [#allocation4], %s311_s8 }
 0x215   : > { %p425_p5 = pnand %p428_p4, %p787_p1 }
 0x217   : > { %p426_p6 = pneg %p425_p5 }
 0x219   : > { %625 = dma.done.wait (%p426_p6), %s312_s28, 128  }
 0x21a   : > { %627 = vsyncadd (%p426_p6), %s312_s28, 4294967168  ;;  %s18_s19 = sadd.s32 1, %s670_s19   ;;  %s932_s3 = sld [smem:[#allocation11_spill]] }
 0x21b   : > { %p15_p8 = scmp.ge.s32.totalorder %s18_s19, 11   ;;  %s933_s15 = sld [smem:[#allocation8_spill]] }
 0x21c   : > { %s934_s17 = sld [smem:[#allocation9_spill]]  ;;  %s936_s9 = smov %s634_s10 }
 0x21d   : > { %s935_s22 = sld [smem:[#allocation10_spill]]  ;;  %s937_s10 = smov %s638_s11 }
 0x21e   : > { %s938_s11 = smov %s780_s4  ;;  %s939_s12 = smov %s646_s13 }
 0x21f   : > { %s940_s13 = smov %s650_s14  ;;  %s942_s16 = smov %s666_s18 }
 0x220   : > { %s941_s14 = smov %s932_s3  ;;  %17 = sbr.rel (!%p15_p8) target bundleno = 9 (0x9), region = 92 }
 0x223   : > { %s943_s18 = smov %s935_s22 }
 0x225   :  { %317 = vsyncpa [#allocation3], 1 }
 0x226   :  { %319 = vsyncpa [#allocation3 + $0x1], 1 }
 0x227   :  { %320 = vsyncpa [#allocation4], 1 }
 0x228   :  { %322 = vsyncpa [#allocation4 + $0x1], 1 }

</bundles_post_ra>
